<compile_context>
chip_gen: v7x
topology: tpu7x:2x2x1
jax: 0.10.0
libtpu: 0.0.40
codegen_flags: <defaults>
</compile_context>

<pallas_src>
import functools

import jax
import jax.numpy as jnp
from jax.experimental import pallas as pl
from jax.experimental.pallas import tpu as pltpu


def _round_up(x, m):
    return (x + m - 1) // m * m


def _merge_kernel(ne_ref, s1_ref, s2_ref, wf_ref, bf_ref, o_ref, *, compute_dtype):
    # ne_ref: (tm, E)  s1_ref/s2_ref: (tm, H)
    # wf_ref: (2H+E, 2*Hp) fused [tanh | sigmoid] weight (already in compute_dtype)
    # bf_ref: (1, 2*Hp) fused bias (f32)
    # o_ref : (tm, Hp) lane-dense gated output
    E = ne_ref.shape[1]
    H = s1_ref.shape[1]
    Hp = o_ref.shape[1]

    cd = compute_dtype
    ne = ne_ref[...].astype(cd)
    s1 = s1_ref[...].astype(cd)
    s2 = s2_ref[...].astype(cd)

    # Single fused gate matmul, accumulated over the three input pieces so no
    # concatenated activation is ever materialized (neither in HBM nor VMEM).
    y = jnp.dot(ne, wf_ref[0:E, :], preferred_element_type=jnp.float32)
    y = y + jnp.dot(s1, wf_ref[E:E + H, :], preferred_element_type=jnp.float32)
    y = y + jnp.dot(s2, wf_ref[E + H:E + 2 * H, :], preferred_element_type=jnp.float32)
    y = y + bf_ref[...]  # f32 bias, broadcast over rows

    # Split fused result: first Hp columns -> tanh half, last Hp -> sigmoid half.
    out = jnp.tanh(y[:, :Hp]) * jax.nn.sigmoid(y[:, Hp:])
    o_ref[...] = out.astype(o_ref.dtype)


def fuse_merge_params(w_merge, b_merge, w_merge_g, b_merge_g,
                      compute_dtype=jnp.bfloat16):
    """Fuse the two gate Linears into one lane-padded weight/bias pair.

    w_merge/w_merge_g: (2H+E, H) (transpose of nn.Linear.weight)
    b_merge/b_merge_g: (1, H)
    Returns w_fused: (2H+E, 2*Hp) in compute_dtype, b_fused: (1, 2*Hp) in f32,
    where Hp = round_up(H, 128). Do this once per model, not per call.
    """
    _, H = w_merge.shape
    Hp = _round_up(H, 128)

    def pad_w(w):
        return jnp.pad(w, ((0, 0), (0, Hp - H)))

    def pad_b(b):
        return jnp.pad(b.reshape(1, H), ((0, 0), (0, Hp - H)))

    w_fused = jnp.concatenate([pad_w(w_merge), pad_w(w_merge_g)], axis=1)
    b_fused = jnp.concatenate([pad_b(b_merge), pad_b(b_merge_g)], axis=1)
    return w_fused.astype(compute_dtype), b_fused.astype(jnp.float32)


def merge_forward(node_embedding, sub_tree_1, sub_tree_2, w_fused, b_fused,
                  *, block_b=256):
    """node_embedding: (B, E); sub_tree_1/2: (B, H); fused params from fuse_merge_params."""
    B, E = node_embedding.shape
    H = sub_tree_1.shape[1]
    D, two_hp = w_fused.shape
    Hp = two_hp // 2
    assert D == 2 * H + E, "fused weight shape does not match inputs"

    compute_dtype = w_fused.dtype

    # Batch tiling: pick a row tile (multiple of 8, up to block_b) and pad the
    # batch so the grid divides evenly. Padding rows compute harmless values
    # and are sliced off below (no pad for the common even case).
    tm = min(block_b, _round_up(B, 8))
    Bp = _round_up(B, tm)
    if Bp != B:
        pad = ((0, Bp - B), (0, 0))
        node_embedding = jnp.pad(node_embedding, pad)
        sub_tree_1 = jnp.pad(sub_tree_1, pad)
        sub_tree_2 = jnp.pad(sub_tree_2, pad)

    kernel = functools.partial(_merge_kernel, compute_dtype=compute_dtype)

    out_padded = pl.pallas_call(
        kernel,
        out_shape=jax.ShapeDtypeStruct((Bp, Hp), node_embedding.dtype),
        grid_spec=pltpu.PrefetchScalarGridSpec(
            num_scalar_prefetch=0,
            grid=(Bp // tm,),
            in_specs=[
                pl.BlockSpec((tm, E), lambda i: (i, 0)),        # node_embedding rows
                pl.BlockSpec((tm, H), lambda i: (i, 0)),        # sub_tree_1 rows
                pl.BlockSpec((tm, H), lambda i: (i, 0)),        # sub_tree_2 rows
                pl.BlockSpec((D, 2 * Hp), lambda i: (0, 0)),    # fused weight (resident)
                pl.BlockSpec((1, 2 * Hp), lambda i: (0, 0)),    # fused bias   (resident)
            ],
            out_specs=pl.BlockSpec((tm, Hp), lambda i: (i, 0)),
        ),
        compiler_params=pltpu.CompilerParams(
            dimension_semantics=("parallel",)),  # lets v7x shard batch tiles across both TCs
    )(node_embedding, sub_tree_1, sub_tree_2, w_fused, b_fused)

    return out_padded[:B, :H]


def init_merge_params(key, hidden_size, embedding_size, dtype=jnp.float32):
    """Deterministic init matching nn.Linear default: U(-1/sqrt(fan_in), 1/sqrt(fan_in))."""
    in_dim = hidden_size * 2 + embedding_size
    bound = 1.0 / jnp.sqrt(jnp.asarray(in_dim, dtype=jnp.float32))
    k1, k2, k3, k4 = jax.random.split(key, 4)
    w_merge = jax.random.uniform(k1, (in_dim, hidden_size), dtype, -bound, bound)
    b_merge = jax.random.uniform(k2, (1, hidden_size), dtype, -bound, bound)
    w_merge_g = jax.random.uniform(k3, (in_dim, hidden_size), dtype, -bound, bound)
    b_merge_g = jax.random.uniform(k4, (1, hidden_size), dtype, -bound, bound)
    return w_merge, b_merge, w_merge_g, b_merge_g


if __name__ == "__main__":
    # Small shapes consistent with the module's forward signature.
    B = 8            # batch (number of tree nodes merged at once)
    hidden = 32      # hidden_size
    embed = 32       # embedding_size

    key = jax.random.PRNGKey(0)
    k_ne, k_s1, k_s2, k_par = jax.random.split(key, 4)

    node_embedding = jax.random.normal(k_ne, (B, embed), jnp.float32)
    sub_tree_1 = jax.random.normal(k_s1, (B, hidden), jnp.float32)
    sub_tree_2 = jax.random.normal(k_s2, (B, hidden), jnp.float32)

    w_merge, b_merge, w_merge_g, b_merge_g = init_merge_params(k_par, hidden, embed)

    # Reference in plain JAX (dropout = identity in eval mode).
    x = jnp.concatenate([node_embedding, sub_tree_1, sub_tree_2], axis=1)
    ref = jnp.tanh(x @ w_merge + b_merge) * jax.nn.sigmoid(x @ w_merge_g + b_merge_g)

    # f32 MXU path: exact-tolerance check against the reference.
    wf32, bf32 = fuse_merge_params(w_merge, b_merge, w_merge_g, b_merge_g,
                                   compute_dtype=jnp.float32)
    out_f32 = jax.block_until_ready(
        merge_forward(node_embedding, sub_tree_1, sub_tree_2, wf32, bf32))
    assert out_f32.shape == (B, hidden)
    assert jnp.allclose(out_f32, ref, atol=1e-5, rtol=1e-5)

    # bf16 MXU path (f32 accumulation + f32 gate math): loose-tolerance sanity check.
    wbf16, bbf16 = fuse_merge_params(w_merge, b_merge, w_merge_g, b_merge_g,
                                     compute_dtype=jnp.bfloat16)
    out_bf16 = jax.block_until_ready(
        merge_forward(node_embedding, sub_tree_1, sub_tree_2, wbf16, bbf16))
    assert out_bf16.shape == (B, hidden)
    assert jnp.allclose(out_bf16, ref, atol=5e-2, rtol=5e-2)

    # TODO(synk): nn.Dropout is stochastic in training mode; inference (identity) is implemented.
    print("KERNEL_OK")
</pallas_src>

<mosaic_0001>
module attributes {stable_mosaic.version = 11 : i64} {
  func.func @_merge_kernel(%arg0: i32, %arg1: memref<8x32xf32, #tpu.memory_space<vmem>>, %arg2: memref<8x32xf32, #tpu.memory_space<vmem>>, %arg3: memref<8x32xf32, #tpu.memory_space<vmem>>, %arg4: memref<96x256xf32, #tpu.memory_space<vmem>>, %arg5: memref<1x256xf32, #tpu.memory_space<vmem>>, %arg6: memref<8x128xf32, #tpu.memory_space<vmem>>) attributes {dimension_semantics = [#tpu.dimension_semantics<parallel>], iteration_bounds = array<i64: 1>, scalar_prefetch = 0 : i64, scratch_operands = 0 : i64, tpu.core_type = #tpu.core_type<tc>, window_params = [{transform_indices = @transform_0, window_bounds = array<i64: 8, 32>}, {transform_indices = @transform_1, window_bounds = array<i64: 8, 32>}, {transform_indices = @transform_2, window_bounds = array<i64: 8, 32>}, {pipeline_mode = #tpu.pipeline_mode<synchronous>, transform_indices = @transform_3, window_bounds = array<i64: 96, 256>}, {pipeline_mode = #tpu.pipeline_mode<synchronous>, transform_indices = @transform_4, window_bounds = array<i64: 1, 256>}, {transform_indices = @transform_5, window_bounds = array<i64: 8, 128>}]} {
    %c0 = arith.constant 0 : index
    %c0_0 = arith.constant 0 : index
    %0 = vector.load %arg1[%c0, %c0_0] : memref<8x32xf32, #tpu.memory_space<vmem>>, vector<8x32xf32>
    %c0_1 = arith.constant 0 : index
    %c0_2 = arith.constant 0 : index
    %1 = vector.load %arg2[%c0_1, %c0_2] : memref<8x32xf32, #tpu.memory_space<vmem>>, vector<8x32xf32>
    %c0_3 = arith.constant 0 : index
    %c0_4 = arith.constant 0 : index
    %2 = vector.load %arg3[%c0_3, %c0_4] : memref<8x32xf32, #tpu.memory_space<vmem>>, vector<8x32xf32>
    %c0_5 = arith.constant 0 : index
    %c0_6 = arith.constant 0 : index
    %3 = vector.load %arg4[%c0_5, %c0_6] : memref<96x256xf32, #tpu.memory_space<vmem>>, vector<32x256xf32>
    %cst = arith.constant dense<0.000000e+00> : vector<8x256xf32>
    %4 = tpu.matmul %0, %3, %cst {dimension_numbers = #tpu.dot_dimension_numbers<[1], [0], [0], [1], [0, 0, 1, 1], [], []>} : vector<8x32xf32>, vector<32x256xf32>, vector<8x256xf32> -> vector<8x256xf32>
    %c32 = arith.constant 32 : index
    %c0_7 = arith.constant 0 : index
    %5 = vector.load %arg4[%c32, %c0_7] : memref<96x256xf32, #tpu.memory_space<vmem>>, vector<32x256xf32>
    %cst_8 = arith.constant dense<0.000000e+00> : vector<8x256xf32>
    %6 = tpu.matmul %1, %5, %cst_8 {dimension_numbers = #tpu.dot_dimension_numbers<[1], [0], [0], [1], [0, 0, 1, 1], [], []>} : vector<8x32xf32>, vector<32x256xf32>, vector<8x256xf32> -> vector<8x256xf32>
    %7 = arith.addf %4, %6 : vector<8x256xf32>
    %c64 = arith.constant 64 : index
    %c0_9 = arith.constant 0 : index
    %8 = vector.load %arg4[%c64, %c0_9] : memref<96x256xf32, #tpu.memory_space<vmem>>, vector<32x256xf32>
    %cst_10 = arith.constant dense<0.000000e+00> : vector<8x256xf32>
    %9 = tpu.matmul %2, %8, %cst_10 {dimension_numbers = #tpu.dot_dimension_numbers<[1], [0], [0], [1], [0, 0, 1, 1], [], []>} : vector<8x32xf32>, vector<32x256xf32>, vector<8x256xf32> -> vector<8x256xf32>
    %10 = arith.addf %7, %9 : vector<8x256xf32>
    %c0_11 = arith.constant 0 : index
    %c0_12 = arith.constant 0 : index
    %11 = vector.load %arg5[%c0_11, %c0_12] : memref<1x256xf32, #tpu.memory_space<vmem>>, vector<1x256xf32>
    %12 = vector.broadcast %11 : vector<1x256xf32> to vector<8x256xf32>
    %13 = arith.addf %10, %12 : vector<8x256xf32>
    %14 = vector.extract_strided_slice %13 {offsets = [0, 0], sizes = [8, 128], strides = [1, 1]} : vector<8x256xf32> to vector<8x128xf32>
    %15 = math.tanh %14 : vector<8x128xf32>
    %16 = vector.extract_strided_slice %13 {offsets = [0, 128], sizes = [8, 128], strides = [1, 1]} : vector<8x256xf32> to vector<8x128xf32>
    %17 = arith.negf %16 : vector<8x128xf32>
    %18 = math.exp %17 : vector<8x128xf32>
    %cst_13 = arith.constant 1.000000e+00 : f32
    %19 = vector.broadcast %cst_13 : f32 to vector<8x128xf32>
    %20 = arith.addf %19, %18 : vector<8x128xf32>
    %21 = arith.divf %19, %20 : vector<8x128xf32>
    %22 = arith.mulf %15, %21 : vector<8x128xf32>
    %c0_14 = arith.constant 0 : index
    %c0_15 = arith.constant 0 : index
    %23 = vector.load %arg6[%c0_14, %c0_15] : memref<8x128xf32, #tpu.memory_space<vmem>>, vector<8x128xf32>
    tpu.vector_store %arg6[%c0_14, %c0_15], %22 {strides = array<i32>} : memref<8x128xf32, #tpu.memory_space<vmem>>, vector<8x128xf32>,
    return
  }
  func.func @transform_0(%arg0: i32) -> (i32, i32) {
    %c0_i32 = arith.constant 0 : i32
    %c0_i32_0 = arith.constant 0 : i32
    return %arg0, %c0_i32 : i32, i32
  }
  func.func @transform_1(%arg0: i32) -> (i32, i32) {
    %c0_i32 = arith.constant 0 : i32
    %c0_i32_0 = arith.constant 0 : i32
    return %arg0, %c0_i32 : i32, i32
  }
  func.func @transform_2(%arg0: i32) -> (i32, i32) {
    %c0_i32 = arith.constant 0 : i32
    %c0_i32_0 = arith.constant 0 : i32
    return %arg0, %c0_i32 : i32, i32
  }
  func.func @transform_3(%arg0: i32) -> (i32, i32) {
    %c0_i32 = arith.constant 0 : i32
    %c0_i32_0 = arith.constant 0 : i32
    %c0_i32_1 = arith.constant 0 : i32
    return %c0_i32, %c0_i32_0 : i32, i32
  }
  func.func @transform_4(%arg0: i32) -> (i32, i32) {
    %c0_i32 = arith.constant 0 : i32
    %c0_i32_0 = arith.constant 0 : i32
    %c0_i32_1 = arith.constant 0 : i32
    return %c0_i32, %c0_i32_0 : i32, i32
  }
  func.func @transform_5(%arg0: i32) -> (i32, i32) {
    %c0_i32 = arith.constant 0 : i32
    %c0_i32_0 = arith.constant 0 : i32
    return %arg0, %c0_i32 : i32, i32
  }
}

</mosaic_0001>

<bundles_post_ra>
// kernel: tpu_custom_call.1
= control target key start
LH: loop header
LB: loop body
LE: loop exit
PB: predicated region body
PF: predicated region fallthrough
CT: control target
= control target key end

     0   :  { %10 = vsyncpa [#allocation3], 0  ;;  %s637_s0 = inlined_call_operand.hbm [shape: f32[8,32], index: 0, kind: input, shape index: {}]   ;;  %s638_s1 = inlined_call_operand.hbm [shape: f32[8,32], index: 1, kind: input, shape index: {}]   ;;  %s639_s2 = inlined_call_operand.hbm [shape: f32[8,32], index: 2, kind: input, shape index: {}]   ;;  %s640_s3 = inlined_call_operand.hbm [shape: f32[96,256], index: 3, kind: input, shape index: {}]   ;;  %s641_s4 = inlined_call_operand.vmem [shape: f32[1,256], index: 4, kind: input, shape index: {}]   ;;  %s642_s5 = inlined_call_operand.hbm [shape: f32[8,128], index: 5, kind: output, shape index: {}]  }
   0x1   :  { %11 = vsyncpa [#allocation6], 0 }
   0x2   :  { %12 = vsyncpa [#allocation9], 0 }
   0x3   :  { %13 = vsyncpa [#allocation4], 0  ;;  %s526_s18 = smov [#allocation5]   ;;  %s527_s20 = smov [#allocation2]  }
   0x4   :  { %s30_s19 = sshll.u32 %s526_s18, 4  ;;  %s20_s21 = sshll.u32 %s527_s20, 4  ;;  %s31_s19 = int_to_ptr.vmem [resolvable:$true] %s30_s19  ;;  %s21_s21 = int_to_ptr.vmem [resolvable:$true] %s20_s21 }
   0x5   :  { %s408_s24 = scalar_lea.hbm %s638_s1, 128 }
   0x6   :  { %p409_p0 = scmp.ne.s32.totalorder %s638_s1, %s408_s24  ;;  %p412_p1 = scmp.lt.u32.totalorder %s408_s24, %s638_s1 }
   0x8   :  { %p414_p2 = pnand %p412_p1, %p409_p0 }
   0xa   :  { %417 = shalt.err (!%p414_p2)
}
   0xb   :  { %s418_s29 = scalar_lea.vmem %s31_s19, 128  ;;  %p423_p4 = scmp.lt.s32.totalorder %s31_s19, %s31_s19 }
   0xc   :  { %p419_p3 = scmp.ne.s32.totalorder %s31_s19, %s418_s29  ;;  %p424_p5 = scmp.lt.s32.totalorder %s418_s29, %s418_s29 }
   0xe   :  { %p425_p6 = por %p424_p5, %p423_p4 }
  0x10   :  { %p426_p7 = pnand %p425_p6, %p419_p3 }
  0x12   :  { %429 = shalt.err (!%p426_p7)
}
  0x13   :  { %33 = dma.hbm_to_vmem [thread:$0]  %s638_s1, 128, %s31_s19, [#allocation6]  }
  0x14   :  { %s430_s9 = scalar_lea.hbm %s637_s0, 128 }
  0x15   :  { %p431_p8 = scmp.ne.s32.totalorder %s637_s0, %s430_s9  ;;  %p434_p9 = scmp.lt.u32.totalorder %s430_s9, %s637_s0 }
  0x17   :  { %p436_p10 = pnand %p434_p9, %p431_p8 }
  0x19   :  { %439 = shalt.err (!%p436_p10)
}
  0x1a   :  { %s440_s14 = scalar_lea.vmem %s21_s21, 128  ;;  %p445_p12 = scmp.lt.s32.totalorder %s21_s21, %s21_s21 }
  0x1b   :  { %p441_p11 = scmp.ne.s32.totalorder %s21_s21, %s440_s14  ;;  %p446_p13 = scmp.lt.s32.totalorder %s440_s14, %s440_s14 }
  0x1d   :  { %p447_p0 = por %p446_p13, %p445_p12 }
  0x1f   :  { %p448_p1 = pnand %p447_p0, %p441_p11 }
  0x21   :  { %451 = shalt.err (!%p448_p1)
}
  0x22   :  { %23 = dma.hbm_to_vmem [thread:$0]  %s637_s0, 128, %s21_s21, [#allocation3]  }
  0x23   :  { %s528_s16 = smov [#allocation7]   ;;  %s529_s18 = smov [#allocation8]  }
  0x24   :  { %s40_s17 = sshll.u32 %s528_s16, 4  ;;  %s49_s19 = sshll.u32 %s529_s18, 4  ;;  %s41_s17 = int_to_ptr.vmem [resolvable:$true] %s40_s17  ;;  %s588_s19 = int_to_ptr.vmem [resolvable:$true] %s49_s19 }
  0x25   :  { %s452_s23 = scalar_lea.hbm %s639_s2, 128 }
  0x26   :  { %p453_p2 = scmp.ne.s32.totalorder %s639_s2, %s452_s23  ;;  %p456_p3 = scmp.lt.u32.totalorder %s452_s23, %s639_s2 }
  0x28   :  { %p458_p4 = pnand %p456_p3, %p453_p2 }
  0x2a   :  { %461 = shalt.err (!%p458_p4)
}
  0x2b   :  { %s462_s0 = scalar_lea.vmem %s41_s17, 128  ;;  %p467_p6 = scmp.lt.s32.totalorder %s41_s17, %s41_s17 }
  0x2c   :  { %p463_p5 = scmp.ne.s32.totalorder %s41_s17, %s462_s0  ;;  %p468_p7 = scmp.lt.s32.totalorder %s462_s0, %s462_s0 }
  0x2e   :  { %p469_p8 = por %p468_p7, %p467_p6 }
  0x30   :  { %p470_p9 = pnand %p469_p8, %p463_p5 }
  0x32   :  { %473 = shalt.err (!%p470_p9)
}
  0x33   :  { %43 = dma.hbm_to_vmem [thread:$0]  %s639_s2, 128, %s41_s17, [#allocation6]  }
  0x34   :  { %s474_s6 = scalar_lea.hbm %s640_s3, 3072 }
  0x35   :  { %p475_p10 = scmp.ne.s32.totalorder %s640_s3, %s474_s6  ;;  %p478_p11 = scmp.lt.u32.totalorder %s474_s6, %s640_s3 }
  0x37   :  { %p480_p12 = pnand %p478_p11, %p475_p10 }
  0x39   :  { %483 = shalt.err (!%p480_p12)
}
  0x3a   :  { %s484_s11 = scalar_lea.vmem %s588_s19, 3072  ;;  %p489_p0 = scmp.lt.s32.totalorder %s588_s19, %s588_s19 }
  0x3b   :  { %p485_p13 = scmp.ne.s32.totalorder %s588_s19, %s484_s11  ;;  %p490_p1 = scmp.lt.s32.totalorder %s484_s11, %s484_s11 }
  0x3d   :  { %p491_p2 = por %p490_p1, %p489_p0 }
  0x3f   :  { %p492_p3 = pnand %p491_p2, %p485_p13 }
  0x41   :  { %495 = shalt.err (!%p492_p3)
}
  0x42   :  { %s530_s2 = smov 256   ;;  %s531_s12 = smov 16  }
  0x43   :  { %55 = dma.hbm_to_vmem [thread:$0]  %s640_s3, 3072, %s588_s19, [#allocation9], %s530_s2, %s530_s2, %s531_s12  }
  0x44   :  { %518 = dma.done.wait [#allocation3], 128  }
  0x45   :  { %519 = vsyncadd [#allocation3], 4294967168 }
  0x46   :  { %520 = dma.done.wait [#allocation6], 256  }
  0x47   :  { %521 = vsyncadd [#allocation6], 4294967040 }
  0x48   :  { %522 = dma.done.wait [#allocation9], 3072  }
  0x49   :  { %523 = vsyncadd [#allocation9], 4294964224  ;;  %v532_v0 = vmov 0.0   ;;  %v74_v1 = vld [vmem:[#allocation8 + $0x8] sm:$0xff]  ;;  %v76_v2 = vld [vmem:[#allocation8 + $0x18] sm:$0xff]  ;;  %vm89_vm0 = vcmask 261120   ;;  %v324_v40 = vlaneseq }
  0x4a   :  { %231 = vmatprep.mubr.f32.mxu0 %v532_v0  ;;  %157 = vmatprep.mubr.f32.mxu1 %v532_v0  ;;  %v73_v3 = vld [vmem:[#allocation8] sm:$0xff]  ;;  %v374_v4 = vpack.c.bf16 %v76_v2, %v74_v1  ;;  %v75_v5 = vld [vmem:[#allocation8 + $0x10] sm:$0xff]  ;;  %v78_v6 = vld [vmem:[#allocation8 + $0x28] sm:$0xff]  ;;  %s533_s15 = smov [#allocation10]  }
  0x4b   :  { %v80_v7 = vld [vmem:[#allocation8 + $0x38] sm:$0xff]  ;;  %v376_v8 = vpack.c.bf16 %v75_v5, %v73_v3  ;;  %v77_v10 = vld [vmem:[#allocation8 + $0x20] sm:$0xff]  ;;  %v79_v11 = vld [vmem:[#allocation8 + $0x30] sm:$0xff]  ;;  %v325_v41 = vshrl.u32 %v324_v40, 7  ;;  %s351_s16 = sshll.u32 %s533_s15, 4  ;;  %s352_s16 = int_to_ptr.vmem [resolvable:$true] %s351_s16 }
  0x4c   :  { %v378_v9 = vpack.c.bf16 %v80_v7, %v78_v6  ;;  %v82_v12 = vld [vmem:[#allocation8 + $0x48] sm:$0xff]  ;;  %375 = vmatprep.subr.bf16.mxu0 %v374_v4  ;;  %v84_v13 = vld [vmem:[#allocation8 + $0x58] sm:$0xff]  ;;  %v380_v15 = vpack.c.bf16 %v79_v11, %v77_v10  ;;  %v81_v18 = vld [vmem:[#allocation8 + $0x40] sm:$0xff]  ;;  %p501_p5 = scmp.lt.s32.totalorder %s352_s16, %s352_s16 }
  0x4d   :  { %v239_v14 = vld [vmem:[#allocation8 + $0x88] sm:$0xff]  ;;  %377 = vmatpush1.bf16.msra.mxu0 %v376_v8  ;;  %v366_v16 = vpack.c.bf16 %v84_v13, %v82_v12  ;;  %v241_v17 = vld [vmem:[#allocation8 + $0x98] sm:$0xff]  ;;  %v83_v19 = vld [vmem:[#allocation8 + $0x50] sm:$0xff]  ;;  %v330_v44 = vsub.s32 1, %v325_v41  ;;  %v326_v53 = vsub.s32 0, %v325_v41 }
  0x4e   :  { %379 = vmatprep.subr.bf16.mxu0 %v378_v9  ;;  %v382_v20 = vpack.c.bf16 %v241_v17, %v239_v14  ;;  %v368_v21 = vpack.c.bf16 %v83_v19, %v81_v18  ;;  %v238_v22 = vld [vmem:[#allocation8 + $0x80] sm:$0xff]  ;;  %v240_v23 = vld [vmem:[#allocation8 + $0x90] sm:$0xff]  ;;  %v86_v24 = vld [vmem:[#allocation8 + $0x68] sm:$0xff] }
  0x4f   :  { %367 = vmatprep.subr.bf16.mxu1 %v366_v16  ;;  %v88_v25 = vld [vmem:[#allocation8 + $0x78] sm:$0xff]  ;;  %v243_v26 = vld [vmem:[#allocation8 + $0xa8] sm:$0xff]  ;;  %v85_v29 = vld [vmem:[#allocation8 + $0x60] sm:$0xff]  ;;  %v384_v32 = vpack.c.bf16 %v240_v23, %v238_v22 }
  0x50   :  { %v245_v27 = vld [vmem:[#allocation8 + $0xb8] sm:$0xff]  ;;  %369 = vmatpush1.bf16.msra.mxu1 %v368_v21  ;;  %v370_v28 = vpack.c.bf16 %v88_v25, %v86_v24  ;;  %v87_v30 = vld [vmem:[#allocation8 + $0x70] sm:$0xff]  ;;  %v70_v31 = vld [vmem:[#allocation2] sm:$0xff] }
  0x51   :  { %381 = vmatpush1.bf16.msra.mxu0 %v380_v15  ;;  %v372_v33 = vpack.c.bf16 %v87_v30, %v85_v29  ;;  %v386_v34 = vpack.c.bf16 %v245_v27, %v243_v26  ;;  %v242_v35 = vld [vmem:[#allocation8 + $0xa0] sm:$0xff]  ;;  %v244_v36 = vld [vmem:[#allocation8 + $0xb0] sm:$0xff]  ;;  %v72_v39 = vld [vmem:[#allocation7] sm:$0xff] }
  0x52   :  { %383 = vmatprep.subr.bf16.mxu0 %v382_v20  ;;  %371 = vmatprep.subr.bf16.mxu1 %v370_v28  ;;  %v71_v37 = vld [vmem:[#allocation5] sm:$0xff]  ;;  %v388_v38 = vpack.c.bf16 %v244_v36, %v242_v35  ;;  %v322_v45 = vld [vmem:[%s641_s4] sm:$0x3]  ;;  %s496_s4 = scalar_lea.vmem %s352_s16, 128 }
  0x53   :  { %v331_v47 = vrot.slane %v322_v45, %v330_v44  ;;  %v327_v54 = vrot.slane %v322_v45, %v326_v53  ;;  %p497_p4 = scmp.ne.s32.totalorder %s352_s16, %s496_s4  ;;  %p502_p6 = scmp.lt.s32.totalorder %s496_s4, %s496_s4 }
  0x54   :  { %363 = vmatmul.mubr.msk.f32.vlgmr.msra.gmra.mrb[0].mxu0 %vm89_vm0, %v70_v31  ;;  %373 = vmatpush1.bf16.msra.mxu1 %v372_v33 }
  0x55   :  { %385 = vmatpush1.bf16.msra.mxu0 %v384_v32  ;;  %313 = vmatprep.mubr.f32.mxu0 %v532_v0  ;;  %p503_p7 = por %p502_p6, %p501_p5 }
  0x56   :  { %387 = vmatprep.subr.bf16.mxu0 %v386_v34 }
  0x57   :  { %362 = vmatmul.mubr.msk.f32.vlgmr.msra.gmra.mrb[0].mxu1 %vm89_vm0, %v71_v37  ;;  %p504_p8 = pnand %p503_p7, %p497_p4 }
  0x59   :  { %389 = vmatpush1.bf16.msra.mxu0 %v388_v38 }
  0x5c   :  { %364 = vmatmul.mubr.msk.f32.vlgmr.msra.gmra.mrb[0].mxu0 %vm89_vm0, %v72_v39 }
 0x12a   :  { %v159_v42 = vpop.f32.mrb[0].mxu1 }
 0x12b   :  { %v161_v43 = vpop.f32.mrb[1].mxu1 }
 0x12f   :  { %v315_v46 = vpop.f32.mrb[0].mxu0 }
 0x130   :  { %v390_v48 = vadd.f32 %v315_v46, %v159_v42  ;;  %v317_v49 = vpop.f32.mrb[1].mxu0 }
 0x131   :  { %v391_v50 = vadd.f32 %v317_v49, %v161_v43 }
 0x132   :  { %v334_v55 = vadd.f32 %v390_v48, %v327_v54 }
 0x133   :  { %v335_v51 = vadd.f32 %v391_v50, %v331_v47 }
 0x135   :  { %v365_v52 = vmul.f32 -1.442695, %v335_v51 }
 0x137   :  { %402 = vpow2.f32 %v365_v52 }
 0x138   :  { %404 = vtanh.f32 %v334_v55 }
 0x141   :  { %v403_v56 = vpop.eup %402 }
 0x142   :  { %v340_v57 = vadd.f32 1.0, %v403_v56  ;;  %v405_v58 = vpop.eup %404 }
 0x144   :  { %406 = vrcp.f32 %v340_v57 }
 0x14e   :  { %v407_v59 = vpop.eup %406 }
 0x14f   :  { %v343_v60 = vmul.f32 %v407_v59, %v405_v58 }
 0x151   :  { %344 = vst [vmem:[#allocation10] sm:$0xff] %v343_v60 }
 0x152   :  { %507 = shalt.err (!%p504_p8)
}
 0x153   :  { %s508_s19 = scalar_lea.hbm %s642_s5, 128 }
 0x154   :  { %p509_p9 = scmp.ne.s32.totalorder %s642_s5, %s508_s19  ;;  %p512_p10 = scmp.lt.u32.totalorder %s508_s19, %s642_s5 }
 0x156   :  { %p514_p11 = pnand %p512_p10, %p509_p9 }
 0x158   :  { %517 = shalt.err (!%p514_p11)
}
 0x159   :  { %354 = dma.vmem_to_hbm [thread:$0]  %s352_s16, 128, %s642_s5, [#allocation4]  }
 0x15a   :  { %524 = dma.done.wait [#allocation4], 128  }
 0x15b   :  { %525 = vsyncadd [#allocation4], 4294967168 }
 0x15c   :  { %358 = vsyncpa [#allocation3], 1 }
 0x15d   :  { %359 = vsyncpa [#allocation6], 1 }
 0x15e   :  { %360 = vsyncpa [#allocation9], 1 }
 0x15f   :  { %361 = vsyncpa [#allocation4], 1 }

</bundles_post_ra>
